<compile_context>
chip_gen: v6e
topology: v6e:2x2x1
jax: 0.10.0
libtpu: 0.0.40
codegen_flags: <defaults>
</compile_context>

<pallas_src>
import functools

import jax
import jax.numpy as jnp
import numpy as np
from jax import lax
from jax.experimental import pallas as pl
from jax.experimental.pallas import tpu as pltpu

BN_EPS = 1e-5
DROPOUT_P = 0.5
# int32 threshold t such that P(bits < t) == 1 - DROPOUT_P for uniform int32 bits.
DROPOUT_KEEP_THRESHOLD_I32 = int(round((1.0 - DROPOUT_P) * 4294967296.0)) - 2147483648


def _round_up(x, m):
    return ((x + m - 1) // m) * m


def _pick_col_tile(p):
    """Largest lane-aligned tile that divides the padded column count."""
    for t in (2048, 1024, 512, 256, 128):
        if p % t == 0:
            return min(t, p)
    return p


def conv_stats_kernel(w_ref, xcol_ref, conv_ref, sum_ref, sumsq_ref):
    """Pass 1: im2col conv matmul for one column tile + batch-stat partials.

    w_ref    : VMEM (C_out, C_in*K)      reshaped conv weight (whole)
    xcol_ref : VMEM (C_in*K, T)          im2col column tile
    conv_ref : VMEM (C_out, T)           conv output tile
    sum_ref  : VMEM (C_out, 1)           per-channel running sum   (accumulated)
    sumsq_ref: VMEM (C_out, 1)           per-channel running sumsq (accumulated)
    """
    i = pl.program_id(0)

    c = jnp.dot(w_ref[...], xcol_ref[...], preferred_element_type=jnp.float32)
    conv_ref[...] = c.astype(conv_ref.dtype)

    @pl.when(i == 0)
    def _():
        sum_ref[...] = jnp.zeros_like(sum_ref)
        sumsq_ref[...] = jnp.zeros_like(sumsq_ref)

    # Lane-padded columns are all-zero (and there is no bias), so they do not
    # perturb the statistics.
    sum_ref[...] += jnp.sum(c, axis=1, keepdims=True)
    sumsq_ref[...] += jnp.sum(c * c, axis=1, keepdims=True)


def bn_relu_dropout_kernel(conv_ref, sum_ref, sumsq_ref, gamma_ref, beta_ref,
                           bits_ref, o_ref, *, count):
    """Pass 2: BatchNorm(train stats) + ReLU + Dropout(0.5) on one column tile.

    conv_ref : VMEM (C_out, T)   conv results
    sum_ref  : VMEM (C_out, 1)   per-channel sum over the whole batch
    sumsq_ref: VMEM (C_out, 1)   per-channel sum of squares
    gamma_ref: VMEM (C_out, 1)   BN weight
    beta_ref : VMEM (C_out, 1)   BN bias
    bits_ref : VMEM (C_out, T)   int32 random bits for dropout
    o_ref    : VMEM (C_out, T)   output tile
    """
    mean = sum_ref[...] * (1.0 / count)                                  # (C_out, 1)
    var = jnp.maximum(sumsq_ref[...] * (1.0 / count) - mean * mean, 0.0)  # biased, clamped
    inv_std = lax.rsqrt(var + BN_EPS)
    s = gamma_ref[...] * inv_std
    # Fold the inverted-dropout 1/(1-p) scale into the affine BN transform
    # (valid because the scale is positive, so it commutes with ReLU).
    inv_keep = 1.0 / (1.0 - DROPOUT_P)
    scale = inv_keep * s                                                 # (C_out, 1)
    shift = inv_keep * (beta_ref[...] - mean * s)                        # (C_out, 1)

    y = jnp.maximum(conv_ref[...] * scale + shift, 0.0)
    keep = bits_ref[...] < DROPOUT_KEEP_THRESHOLD_I32                    # P(keep)=1-p
    o_ref[...] = jnp.where(keep, y, 0.0).astype(o_ref.dtype)


def conv_block_forward(x, w, b, gamma, beta, dropout_key):
    """x: (N, C_in, L) f32. Returns (N, C_out, L_out) f32 (L_out == L for odd K)."""
    N, C_in, L = x.shape
    C_out, _, K = w.shape
    pad = K // 2
    L_out = L + 2 * pad - K + 1
    NL = N * L_out
    P = _round_up(NL, 128)          # lane-dense padded column count
    T = _pick_col_tile(P)
    n_tiles = P // T
    CK = C_in * K

    # ---- glue: "same" padding + im2col to a (C_in*K, N*L_out) lane-dense slab.
    x_pad = jnp.pad(x, ((0, 0), (0, 0), (pad, pad)))
    taps = [x_pad[:, :, t:t + L_out] for t in range(K)]        # K x (N, C_in, L_out)
    x_col = jnp.stack(taps, axis=2)                            # (N, C_in, K, L_out)
    x_col = x_col.transpose(1, 2, 0, 3).reshape(CK, NL)
    x_col = jnp.pad(x_col, ((0, 0), (0, P - NL)))              # zero cols -> stats unaffected

    w2 = w.reshape(C_out, CK)
    # Conv bias is intentionally unused: training-mode BatchNorm subtracts the
    # per-channel batch mean, which absorbs the bias exactly.
    del b

    # Dropout random bits, lane-dense, int32 (threshold compare happens in-kernel).
    bits_u32 = jax.random.bits(dropout_key, (C_out, P), dtype=jnp.uint32)
    bits = lax.bitcast_convert_type(bits_u32, jnp.int32)

    # ---- pass 1: conv matmul per column tile + per-channel sum / sumsq.
    conv_slab, sums, sumsqs = pl.pallas_call(
        conv_stats_kernel,
        out_shape=(jax.ShapeDtypeStruct((C_out, P), jnp.float32),
                   jax.ShapeDtypeStruct((C_out, 1), jnp.float32),
                   jax.ShapeDtypeStruct((C_out, 1), jnp.float32)),
        grid=(n_tiles,),
        in_specs=[
            pl.BlockSpec((C_out, CK), lambda i: (0, 0)),   # weight, whole
            pl.BlockSpec((CK, T), lambda i: (0, i)),       # im2col column tile
        ],
        out_specs=(
            pl.BlockSpec((C_out, T), lambda i: (0, i)),    # conv tile
            pl.BlockSpec((C_out, 1), lambda i: (0, 0)),    # sum accumulator
            pl.BlockSpec((C_out, 1), lambda i: (0, 0)),    # sumsq accumulator
        ),
        compiler_params=pltpu.CompilerParams(
            dimension_semantics=("arbitrary",)),           # stats reduction axis
    )(w2, x_col)

    # ---- pass 2: BN apply + ReLU + dropout, fully parallel over column tiles.
    out_slab = pl.pallas_call(
        functools.partial(bn_relu_dropout_kernel, count=float(NL)),
        out_shape=jax.ShapeDtypeStruct((C_out, P), x.dtype),
        grid=(n_tiles,),
        in_specs=[
            pl.BlockSpec((C_out, T), lambda i: (0, i)),    # conv tile
            pl.BlockSpec((C_out, 1), lambda i: (0, 0)),    # sums
            pl.BlockSpec((C_out, 1), lambda i: (0, 0)),    # sumsqs
            pl.BlockSpec((C_out, 1), lambda i: (0, 0)),    # gamma
            pl.BlockSpec((C_out, 1), lambda i: (0, 0)),    # beta
            pl.BlockSpec((C_out, T), lambda i: (0, i)),    # dropout bits tile
        ],
        out_specs=pl.BlockSpec((C_out, T), lambda i: (0, i)),
        compiler_params=pltpu.CompilerParams(
            dimension_semantics=("parallel",)),            # usable by both v7x TCs
    )(conv_slab, sums, sumsqs, gamma.reshape(C_out, 1), beta.reshape(C_out, 1), bits)

    # ---- un-flatten: (C_out, N*L_out) -> (N, C_out, L_out)
    return out_slab[:, :NL].reshape(C_out, N, L_out).transpose(1, 0, 2)


def reference_pre_dropout(x, w, b, gamma, beta):
    """Plain-JAX conv + training-mode BN + ReLU (no dropout), for checking."""
    K = w.shape[2]
    pad = K // 2
    conv = lax.conv_general_dilated(x, w, (1,), [(pad, pad)],
                                    dimension_numbers=("NCH", "OIH", "NCH"))
    conv = conv + b[None, :, None]
    mean = conv.mean(axis=(0, 2), keepdims=True)
    var = ((conv - mean) ** 2).mean(axis=(0, 2), keepdims=True)
    y = gamma[None, :, None] * (conv - mean) / jnp.sqrt(var + BN_EPS) \
        + beta[None, :, None]
    return jnp.maximum(y, 0.0)


if __name__ == "__main__":
    # Small shapes consistent with ConvBlock(in_channels, out_channels, kernel_size).
    N, C_IN, C_OUT, K, L = 2, 4, 8, 5, 16

    key = jax.random.PRNGKey(0)
    kx, kw, kb, kd = jax.random.split(key, 4)

    x = jax.random.normal(kx, (N, C_IN, L), dtype=jnp.float32)
    fan_in = C_IN * K
    bound = 1.0 / np.sqrt(fan_in)
    w = jax.random.uniform(kw, (C_OUT, C_IN, K), jnp.float32, -bound, bound)
    b = jax.random.uniform(kb, (C_OUT,), jnp.float32, -bound, bound)
    gamma = jnp.ones((C_OUT,), jnp.float32)   # BatchNorm1d default init
    beta = jnp.zeros((C_OUT,), jnp.float32)

    out = conv_block_forward(x, w, b, gamma, beta, dropout_key=kd)
    out = jax.block_until_ready(out)

    # Sanity check: kept (strictly positive) outputs must equal
    # 2 * (conv + BN + ReLU) reference (inverted dropout, p = 0.5).
    ref = np.asarray(reference_pre_dropout(x, w, b, gamma, beta))
    out_np = np.asarray(out)
    assert out_np.shape == (N, C_OUT, L)
    kept = out_np > 0
    if kept.any():
        np.testing.assert_allclose(out_np[kept], 2.0 * ref[kept],
                                   rtol=1e-4, atol=1e-4)

    print("KERNEL_OK")
</pallas_src>

<mosaic_0001>
module attributes {stable_mosaic.version = 11 : i64} {
  func.func @conv_stats_kernel(%arg0: i32, %arg1: memref<8x20xf32, #tpu.memory_space<vmem>>, %arg2: memref<20x128xf32, #tpu.memory_space<vmem>>, %arg3: memref<8x128xf32, #tpu.memory_space<vmem>>, %arg4: memref<8x1xf32, #tpu.memory_space<vmem>>, %arg5: memref<8x1xf32, #tpu.memory_space<vmem>>) attributes {dimension_semantics = [#tpu.dimension_semantics<arbitrary>], iteration_bounds = array<i64: 1>, scalar_prefetch = 0 : i64, scratch_operands = 0 : i64, tpu.core_type = #tpu.core_type<tc>, window_params = [{pipeline_mode = #tpu.pipeline_mode<synchronous>, transform_indices = @transform_0, window_bounds = array<i64: 8, 20>}, {transform_indices = @transform_1, window_bounds = array<i64: 20, 128>}, {transform_indices = @transform_2, window_bounds = array<i64: 8, 128>}, {pipeline_mode = #tpu.pipeline_mode<synchronous>, transform_indices = @transform_3, window_bounds = array<i64: 8, 1>}, {pipeline_mode = #tpu.pipeline_mode<synchronous>, transform_indices = @transform_4, window_bounds = array<i64: 8, 1>}]} {
    %c0 = arith.constant 0 : index
    %c0_0 = arith.constant 0 : index
    %0 = vector.load %arg1[%c0, %c0_0] : memref<8x20xf32, #tpu.memory_space<vmem>>, vector<8x20xf32>
    %c0_1 = arith.constant 0 : index
    %c0_2 = arith.constant 0 : index
    %1 = vector.load %arg2[%c0_1, %c0_2] : memref<20x128xf32, #tpu.memory_space<vmem>>, vector<20x128xf32>
    %cst = arith.constant dense<0.000000e+00> : vector<8x128xf32>
    %2 = tpu.matmul %0, %1, %cst {dimension_numbers = #tpu.dot_dimension_numbers<[1], [0], [0], [1], [0, 0, 1, 1], [], []>} : vector<8x20xf32>, vector<20x128xf32>, vector<8x128xf32> -> vector<8x128xf32>
    %c0_3 = arith.constant 0 : index
    %c0_4 = arith.constant 0 : index
    %3 = vector.load %arg3[%c0_3, %c0_4] : memref<8x128xf32, #tpu.memory_space<vmem>>, vector<8x128xf32>
    tpu.vector_store %arg3[%c0_3, %c0_4], %2 {strides = array<i32>} : memref<8x128xf32, #tpu.memory_space<vmem>>, vector<8x128xf32>,
    %c0_i32 = arith.constant 0 : i32
    %4 = arith.cmpi eq, %arg0, %c0_i32 : i32
    %5 = arith.extui %4 : i1 to i32
    %c0_i32_5 = arith.constant 0 : i32
    %6 = arith.cmpi ne, %5, %c0_i32_5 : i32
    scf.if %6 {
      %cst_16 = arith.constant 0.000000e+00 : f32
      %18 = vector.broadcast %cst_16 : f32 to vector<8x1xf32>
      %c0_17 = arith.constant 0 : index
      %c0_18 = arith.constant 0 : index
      %19 = vector.load %arg4[%c0_17, %c0_18] : memref<8x1xf32, #tpu.memory_space<vmem>>, vector<8x1xf32>
      tpu.vector_store %arg4[%c0_17, %c0_18], %18 {strides = array<i32>} : memref<8x1xf32, #tpu.memory_space<vmem>>, vector<8x1xf32>,
      %cst_19 = arith.constant 0.000000e+00 : f32
      %20 = vector.broadcast %cst_19 : f32 to vector<8x1xf32>
      %c0_20 = arith.constant 0 : index
      %c0_21 = arith.constant 0 : index
      %21 = vector.load %arg5[%c0_20, %c0_21] : memref<8x1xf32, #tpu.memory_space<vmem>>, vector<8x1xf32>
      tpu.vector_store %arg5[%c0_20, %c0_21], %20 {strides = array<i32>} : memref<8x1xf32, #tpu.memory_space<vmem>>, vector<8x1xf32>,
    } else {
    }
    %c0_6 = arith.constant 0 : index
    %c0_7 = arith.constant 0 : index
    %7 = vector.load %arg4[%c0_6, %c0_7] : memref<8x1xf32, #tpu.memory_space<vmem>>, vector<8x1xf32>
    %cst_8 = arith.constant dense<0.000000e+00> : vector<8xf32>
    %8 = vector.multi_reduction <add>, %2, %cst_8 [1] : vector<8x128xf32> to vector<8xf32>
    %9 = vector.shape_cast %8 : vector<8xf32> to vector<8x1xf32>
    %10 = arith.addf %7, %9 : vector<8x1xf32>
    %c0_9 = arith.constant 0 : index
    %c0_10 = arith.constant 0 : index
    %11 = vector.load %arg4[%c0_9, %c0_10] : memref<8x1xf32, #tpu.memory_space<vmem>>, vector<8x1xf32>
    tpu.vector_store %arg4[%c0_9, %c0_10], %10 {strides = array<i32>} : memref<8x1xf32, #tpu.memory_space<vmem>>, vector<8x1xf32>,
    %c0_11 = arith.constant 0 : index
    %c0_12 = arith.constant 0 : index
    %12 = vector.load %arg5[%c0_11, %c0_12] : memref<8x1xf32, #tpu.memory_space<vmem>>, vector<8x1xf32>
    %13 = arith.mulf %2, %2 : vector<8x128xf32>
    %cst_13 = arith.constant dense<0.000000e+00> : vector<8xf32>
    %14 = vector.multi_reduction <add>, %13, %cst_13 [1] : vector<8x128xf32> to vector<8xf32>
    %15 = vector.shape_cast %14 : vector<8xf32> to vector<8x1xf32>
    %16 = arith.addf %12, %15 : vector<8x1xf32>
    %c0_14 = arith.constant 0 : index
    %c0_15 = arith.constant 0 : index
    %17 = vector.load %arg5[%c0_14, %c0_15] : memref<8x1xf32, #tpu.memory_space<vmem>>, vector<8x1xf32>
    tpu.vector_store %arg5[%c0_14, %c0_15], %16 {strides = array<i32>} : memref<8x1xf32, #tpu.memory_space<vmem>>, vector<8x1xf32>,
    return
  }
  func.func @transform_0(%arg0: i32) -> (i32, i32) {
    %c0_i32 = arith.constant 0 : i32
    %c0_i32_0 = arith.constant 0 : i32
    %c0_i32_1 = arith.constant 0 : i32
    return %c0_i32, %c0_i32_0 : i32, i32
  }
  func.func @transform_1(%arg0: i32) -> (i32, i32) {
    %c0_i32 = arith.constant 0 : i32
    %c0_i32_0 = arith.constant 0 : i32
    return %c0_i32, %arg0 : i32, i32
  }
  func.func @transform_2(%arg0: i32) -> (i32, i32) {
    %c0_i32 = arith.constant 0 : i32
    %c0_i32_0 = arith.constant 0 : i32
    return %c0_i32, %arg0 : i32, i32
  }
  func.func @transform_3(%arg0: i32) -> (i32, i32) {
    %c0_i32 = arith.constant 0 : i32
    %c0_i32_0 = arith.constant 0 : i32
    %c0_i32_1 = arith.constant 0 : i32
    return %c0_i32, %c0_i32_0 : i32, i32
  }
  func.func @transform_4(%arg0: i32) -> (i32, i32) {
    %c0_i32 = arith.constant 0 : i32
    %c0_i32_0 = arith.constant 0 : i32
    %c0_i32_1 = arith.constant 0 : i32
    return %c0_i32, %c0_i32_0 : i32, i32
  }
}

</mosaic_0001>

<bundles_post_ra>
// kernel: tpu_custom_call.1
= control target key start
LH: loop header
LB: loop body
LE: loop exit
PB: predicated region body
PF: predicated region fallthrough
CT: control target
= control target key end

     0   :  { %10 = vsyncpa [#allocation3], 0  ;;  %s318_s0 = inlined_call_operand.hbm [shape: f32[8,20], index: 0, kind: input, shape index: {}]   ;;  %s319_s1 = inlined_call_operand.hbm [shape: f32[20,128], index: 1, kind: input, shape index: {}]   ;;  %s320_s2 = inlined_call_operand.hbm [shape: f32[8,128], index: 2, kind: output, shape index: {0}]   ;;  %s321_s3 = inlined_call_operand.vmem [shape: f32[8,1], index: 3, kind: output, shape index: {1}]   ;;  %s322_s4 = inlined_call_operand.vmem [shape: f32[8,1], index: 4, kind: output, shape index: {2}]  }
   0x1   :  { %11 = vsyncpa [#allocation6], 0 }
   0x2   :  { %12 = vsyncpa [#allocation4], 0  ;;  %s255_s15 = smov [#allocation2]   ;;  %s256_s17 = smov [#allocation5]  }
   0x3   :  { %s19_s16 = sshll.u32 %s255_s15, 4  ;;  %s28_s18 = sshll.u32 %s256_s17, 4  ;;  %s20_s16 = int_to_ptr.vmem [resolvable:$true] %s19_s16  ;;  %s29_s18 = int_to_ptr.vmem [resolvable:$true] %s28_s18 }
   0x4   :  { %s197_s19 = scalar_lea.vmem %s20_s16, 128  ;;  %p202_p1 = scmp.lt.s32.totalorder %s20_s16, %s20_s16 }
   0x5   :  { %p198_p0 = scmp.ne.s32.totalorder %s20_s16, %s197_s19  ;;  %p203_p2 = scmp.lt.s32.totalorder %s197_s19, %s197_s19 }
   0x7   :  { %p204_p3 = por %p203_p2, %p202_p1 }
   0x9   :  { %p205_p4 = pnand %p204_p3, %p198_p0 }
   0xb   :  { %208 = shalt.err (!%p205_p4)
}
   0xc   :  { %22 = dma.hbm_to_vmem [thread:$0]  %s318_s0, 128, %s20_s16, [#allocation3]  }
   0xd   :  { %s217_s22 = scalar_lea.vmem %s29_s18, 384  ;;  %p222_p6 = scmp.lt.s32.totalorder %s29_s18, %s29_s18 }
   0xe   :  { %p218_p5 = scmp.ne.s32.totalorder %s29_s18, %s217_s22  ;;  %p223_p7 = scmp.lt.s32.totalorder %s217_s22, %s217_s22 }
  0x10   :  { %p224_p8 = por %p223_p7, %p222_p6 }
  0x12   :  { %p225_p9 = pnand %p224_p8, %p218_p5 }
  0x14   :  { %228 = shalt.err (!%p225_p9)
}
  0x15   :  { %s257_s23 = smov 128   ;;  %s258_s24 = smov 8  }
  0x16   :  { %34 = dma.hbm_to_vmem [thread:$0]  %s319_s1, 384, %s29_s18, [#allocation6], %s257_s23, %s257_s23, %s258_s24  }
  0x17   :  { %249 = dma.done.wait [#allocation3], 128  }
  0x18   :  { %250 = vsyncadd [#allocation3], 4294967168 }
  0x19   :  { %251 = dma.done.wait [#allocation6], 384  }
  0x1a   :  { %252 = vsyncadd [#allocation6], 4294966912  ;;  %v259_v0 = vmov 0.0   ;;  %vm260_vm0 = vmmov 0   ;;  %vm49_vm1 = vcmask 1043456   ;;  %v43_v2 = vld [vmem:[#allocation5 + $0x8] sm:$0xff] }
  0x1b   :  { %173 = vmatprep.subr.mxu0 %v259_v0  ;;  %179 = vmatprep.mubr.msk.f32.mxu0 %vm260_vm0, %v259_v0  ;;  %v44_v1 = vld [vmem:[#allocation5 + $0x10] sm:$0xf]  ;;  %v42_v3 = vld [vmem:[#allocation5] sm:$0xff]  ;;  %v41_v4 = vld [vmem:[#allocation2] sm:$0xff]  ;;  %vm45_vm2 = vcmask 162816   ;;  %vm128_vm3 = vcmask 7168  }
  0x1c   :  { %174 = vmatpush3.msk.msra.mxu0 %vm49_vm1, %v44_v1  ;;  %129 = vst.msk [vmem:[%s321_s3] sm:$0xff] %vm128_vm3, %v259_v0  ;;  %130 = vst.msk [vmem:[%s322_s4] sm:$0xff] %vm128_vm3, %v259_v0  ;;  %s261_s29 = smov [#allocation7]  }
  0x1d   :  { %175 = vmatprep.subr.mxu0 %v259_v0  ;;  %s149_s30 = sshll.u32 %s261_s29, 4  ;;  %s150_s30 = int_to_ptr.vmem [resolvable:$true] %s149_s30 }
  0x1e   :  { %176 = vmatpush3.msra.mxu0 %v43_v2  ;;  %s229_s5 = scalar_lea.vmem %s150_s30, 128  ;;  %p234_p11 = scmp.lt.s32.totalorder %s150_s30, %s150_s30 }
  0x1f   :  { %177 = vmatprep.subr.mxu0 %v259_v0  ;;  %p230_p10 = scmp.ne.s32.totalorder %s150_s30, %s229_s5  ;;  %p235_p12 = scmp.lt.s32.totalorder %s229_s5, %s229_s5 }
  0x20   :  { %178 = vmatpush3.msra.mxu0 %v42_v3 }
  0x21   :  { %180 = vmatmul.mubr.msk.f32.vlgmr.msra.gmra.mxu0 %vm45_vm2, %v41_v4  ;;  %p236_p13 = por %p235_p12, %p234_p11 }
  0x23   :  { %p237_p0 = pnand %p236_p13, %p230_p10 }
  0xe1   :  { %v119_v5 = vpop.f32.mrf.mxu0 }
  0xe2   :  { %123 = vst [vmem:[#allocation7] sm:$0xff] %v119_v5  ;;  %132 = vadd.xlane.f32.xlu0 %v119_v5  ;;  %v138_v7 = vmul.f32 %v119_v5, %v119_v5 }
  0xe3   :  { %v181_v6 = vpop.f32.mrf.mxu0 }
  0xe6   :  { %139 = vadd.xlane.f32.xlu0 %v138_v7 }
  0xe7   :  { %240 = shalt.err (!%p237_p0)
}
  0xe8   :  { %152 = dma.vmem_to_hbm [thread:$0]  %s150_s30, 128, %s320_s2, [#allocation4]   ;;  %v131_v8 = vld [vmem:[%s321_s3] sm:$0xff] }
  0xe9   :  { %v137_v11 = vld [vmem:[%s322_s4] sm:$0xff] }
 0x16b   :  { %v133_v9 = vpop.xlane.xlu0 %132 }
 0x16c   :  { %v134_v10 = vadd.f32 %v133_v9, %v131_v8 }
 0x16e   :  { %136 = vst.msk [vmem:[%s321_s3] sm:$0xff] %vm128_vm3, %v134_v10 }
 0x16f   :  { %v140_v12 = vpop.xlane.xlu0 %139 }
 0x170   :  { %v141_v13 = vadd.f32 %v140_v12, %v137_v11 }
 0x172   :  { %142 = vst.msk [vmem:[%s322_s4] sm:$0xff] %vm128_vm3, %v141_v13 }
 0x173   :  { %253 = dma.done.wait [#allocation4], 128  }
 0x174   :  { %254 = vsyncadd [#allocation4], 4294967168 }
 0x175   :  { %164 = vsyncpa [#allocation3], 1 }
 0x176   :  { %165 = vsyncpa [#allocation6], 1 }
 0x177   :  { %166 = vsyncpa [#allocation4], 1 }

</bundles_post_ra>
